<compile_context>
chip_gen: v5e
topology: v5e:2x2
jax: 0.10.0
libtpu: 0.0.40
codegen_flags: <defaults>
</compile_context>

<pallas_src>
import functools
import math

import jax
import jax.numpy as jnp
from jax.experimental import pallas as pl
from jax.experimental.pallas import tpu as pltpu

INPUT_DIM = 10
_LANE = 128          # vreg lane width
_TB_MAX = 16384      # lanes (batch rows) per tile:
                     #   x tile  (10->16 sublanes, TB lanes) f32 = 64*TB bytes
                     #   out tile (1->8 sublanes,  TB lanes) f32 = 32*TB bytes
                     # double-buffered total ~= 192*TB ~= 3 MiB at TB=16384,
                     # well inside v5e's 16 MiB scoped-VMEM default and
                     # v6e (32 MiB) / v7x (64 MiB physical).


def _mod2sin_kernel(w_ref, x_ref, o_ref, *, input_dim):
    # w_ref: (input_dim,) f32 in SMEM  (10 scalar weights)
    # x_ref: (input_dim, TB) f32 in VMEM — batch on lanes (lane-dense)
    # o_ref: (1, TB)         f32 in VMEM — lane-dense output (unmasked vst)
    #
    # Contraction over input_dim as unrolled scalar*vector FMAs on the VPU.
    acc = x_ref[0:1, :] * w_ref[0]
    for d in range(1, input_dim):
        acc = acc + x_ref[d:d + 1, :] * w_ref[d]
    o_ref[...] = (1.0 - jnp.cos(jnp.float32(math.pi) * acc)) * 0.5


def mod2sin_predictor(x, w):
    """x: (B, input_dim) f32; w: (1, input_dim) f32 (PyTorch nn.Linear weight).

    Returns (B, 1) f32 = (1 - cos(pi * (x @ w.T))) / 2, matching the module.
    """
    B, D = x.shape

    # Layout plumbing (wrapper-side): put batch on the lane axis and pad it to
    # a multiple of 128 so every block satisfies the (8,128) lane constraint.
    x_t = x.T                                    # (D, B)
    pad = (-B) % _LANE
    if pad:
        x_t = jnp.pad(x_t, ((0, 0), (0, pad)))   # padded lanes -> cos(0), sliced off
    Bp = B + pad

    w_vec = w.reshape(D).astype(jnp.float32)     # (D,) -> SMEM scalars

    tb = min(Bp, _TB_MAX)                        # lane-tile size (multiple of 128)
    grid = (pl.cdiv(Bp, tb),)

    kernel = functools.partial(_mod2sin_kernel, input_dim=D)

    out = pl.pallas_call(
        kernel,
        out_shape=jax.ShapeDtypeStruct((1, Bp), jnp.float32),
        grid_spec=pl.GridSpec(
            grid=grid,
            in_specs=[
                # Weights: 10 floats, untiled, resident in SMEM for the whole call.
                pl.BlockSpec(memory_space=pltpu.MemorySpace.SMEM),
                # Input tile: batch on lanes, full input_dim on sublanes.
                pl.BlockSpec((D, tb), lambda i: (0, i)),
            ],
            # Lane-dense output tile (>=128 wide -> unmasked vector stores).
            out_specs=pl.BlockSpec((1, tb), lambda i: (0, i)),
        ),
        compiler_params=pltpu.CompilerParams(
            # Batch tiles are independent -> shard across v7x's 2 TensorCores.
            dimension_semantics=("parallel",),
        ),
        cost_estimate=pl.CostEstimate(
            flops=2 * B * D + 3 * B,
            transcendentals=B,
            bytes_accessed=4 * B * D + 4 * D + 4 * B,
        ),
    )(w_vec, x_t)

    # Back to the PyTorch-shaped (B, 1) output.
    return out[0, :B].reshape(B, 1)


if __name__ == "__main__":
    key = jax.random.PRNGKey(0)
    k_w, k_idx = jax.random.split(key)

    batch = 8

    # Deterministic parameter init (same shape as nn.Linear(10, 1, bias=False).weight)
    bound = 1.0 / math.sqrt(INPUT_DIM)
    weight = jax.random.uniform(
        k_w, (1, INPUT_DIM), dtype=jnp.float32, minval=-bound, maxval=bound
    )

    # Example input: one-hot vectors of shape (batch, input_dim)
    idx = jax.random.randint(k_idx, (batch,), 0, INPUT_DIM)
    x = jax.nn.one_hot(idx, INPUT_DIM, dtype=jnp.float32)

    out = mod2sin_predictor(x, weight)
    out = jax.block_until_ready(out)

    # Reference check in plain JAX
    ref = (1.0 - jnp.cos(jnp.float32(math.pi) * (x @ weight.T))) / 2.0
    assert out.shape == (batch, 1)
    assert jnp.allclose(out, ref, atol=1e-5), (out, ref)

    print("KERNEL_OK")
</pallas_src>

<mosaic_0001>
module attributes {stable_mosaic.version = 11 : i64} {
  func.func @_mod2sin_kernel(%arg0: i32, %arg1: memref<10xf32, #tpu.memory_space<smem>>, %arg2: memref<10x128xf32, #tpu.memory_space<vmem>>, %arg3: memref<1x128xf32, #tpu.memory_space<vmem>>) attributes {dimension_semantics = [#tpu.dimension_semantics<parallel>], iteration_bounds = array<i64: 1>, scalar_prefetch = 0 : i64, scratch_operands = 0 : i64, tpu.core_type = #tpu.core_type<tc>, window_params = [{transform_indices = @transform_0, window_bounds = array<i64: 10>}, {transform_indices = @transform_1, window_bounds = array<i64: 10, 128>}, {transform_indices = @transform_2, window_bounds = array<i64: 1, 128>}]} {
    %c0 = arith.constant 0 : index
    %c0_0 = arith.constant 0 : index
    %0 = vector.load %arg2[%c0, %c0_0] : memref<10x128xf32, #tpu.memory_space<vmem>>, vector<1x128xf32>
    %c0_1 = arith.constant 0 : index
    %1 = memref.load %arg1[%c0_1] : memref<10xf32, #tpu.memory_space<smem>>
    %2 = vector.broadcast %1 : f32 to vector<1x128xf32>
    %3 = arith.mulf %0, %2 : vector<1x128xf32>
    %c1 = arith.constant 1 : index
    %c0_2 = arith.constant 0 : index
    %4 = vector.load %arg2[%c1, %c0_2] : memref<10x128xf32, #tpu.memory_space<vmem>>, vector<1x128xf32>
    %c1_3 = arith.constant 1 : index
    %5 = memref.load %arg1[%c1_3] : memref<10xf32, #tpu.memory_space<smem>>
    %6 = vector.broadcast %5 : f32 to vector<1x128xf32>
    %7 = arith.mulf %4, %6 : vector<1x128xf32>
    %8 = arith.addf %3, %7 : vector<1x128xf32>
    %c2 = arith.constant 2 : index
    %c0_4 = arith.constant 0 : index
    %9 = vector.load %arg2[%c2, %c0_4] : memref<10x128xf32, #tpu.memory_space<vmem>>, vector<1x128xf32>
    %c2_5 = arith.constant 2 : index
    %10 = memref.load %arg1[%c2_5] : memref<10xf32, #tpu.memory_space<smem>>
    %11 = vector.broadcast %10 : f32 to vector<1x128xf32>
    %12 = arith.mulf %9, %11 : vector<1x128xf32>
    %13 = arith.addf %8, %12 : vector<1x128xf32>
    %c3 = arith.constant 3 : index
    %c0_6 = arith.constant 0 : index
    %14 = vector.load %arg2[%c3, %c0_6] : memref<10x128xf32, #tpu.memory_space<vmem>>, vector<1x128xf32>
    %c3_7 = arith.constant 3 : index
    %15 = memref.load %arg1[%c3_7] : memref<10xf32, #tpu.memory_space<smem>>
    %16 = vector.broadcast %15 : f32 to vector<1x128xf32>
    %17 = arith.mulf %14, %16 : vector<1x128xf32>
    %18 = arith.addf %13, %17 : vector<1x128xf32>
    %c4 = arith.constant 4 : index
    %c0_8 = arith.constant 0 : index
    %19 = vector.load %arg2[%c4, %c0_8] : memref<10x128xf32, #tpu.memory_space<vmem>>, vector<1x128xf32>
    %c4_9 = arith.constant 4 : index
    %20 = memref.load %arg1[%c4_9] : memref<10xf32, #tpu.memory_space<smem>>
    %21 = vector.broadcast %20 : f32 to vector<1x128xf32>
    %22 = arith.mulf %19, %21 : vector<1x128xf32>
    %23 = arith.addf %18, %22 : vector<1x128xf32>
    %c5 = arith.constant 5 : index
    %c0_10 = arith.constant 0 : index
    %24 = vector.load %arg2[%c5, %c0_10] : memref<10x128xf32, #tpu.memory_space<vmem>>, vector<1x128xf32>
    %c5_11 = arith.constant 5 : index
    %25 = memref.load %arg1[%c5_11] : memref<10xf32, #tpu.memory_space<smem>>
    %26 = vector.broadcast %25 : f32 to vector<1x128xf32>
    %27 = arith.mulf %24, %26 : vector<1x128xf32>
    %28 = arith.addf %23, %27 : vector<1x128xf32>
    %c6 = arith.constant 6 : index
    %c0_12 = arith.constant 0 : index
    %29 = vector.load %arg2[%c6, %c0_12] : memref<10x128xf32, #tpu.memory_space<vmem>>, vector<1x128xf32>
    %c6_13 = arith.constant 6 : index
    %30 = memref.load %arg1[%c6_13] : memref<10xf32, #tpu.memory_space<smem>>
    %31 = vector.broadcast %30 : f32 to vector<1x128xf32>
    %32 = arith.mulf %29, %31 : vector<1x128xf32>
    %33 = arith.addf %28, %32 : vector<1x128xf32>
    %c7 = arith.constant 7 : index
    %c0_14 = arith.constant 0 : index
    %34 = vector.load %arg2[%c7, %c0_14] : memref<10x128xf32, #tpu.memory_space<vmem>>, vector<1x128xf32>
    %c7_15 = arith.constant 7 : index
    %35 = memref.load %arg1[%c7_15] : memref<10xf32, #tpu.memory_space<smem>>
    %36 = vector.broadcast %35 : f32 to vector<1x128xf32>
    %37 = arith.mulf %34, %36 : vector<1x128xf32>
    %38 = arith.addf %33, %37 : vector<1x128xf32>
    %c8 = arith.constant 8 : index
    %c0_16 = arith.constant 0 : index
    %39 = vector.load %arg2[%c8, %c0_16] : memref<10x128xf32, #tpu.memory_space<vmem>>, vector<1x128xf32>
    %c8_17 = arith.constant 8 : index
    %40 = memref.load %arg1[%c8_17] : memref<10xf32, #tpu.memory_space<smem>>
    %41 = vector.broadcast %40 : f32 to vector<1x128xf32>
    %42 = arith.mulf %39, %41 : vector<1x128xf32>
    %43 = arith.addf %38, %42 : vector<1x128xf32>
    %c9 = arith.constant 9 : index
    %c0_18 = arith.constant 0 : index
    %44 = vector.load %arg2[%c9, %c0_18] : memref<10x128xf32, #tpu.memory_space<vmem>>, vector<1x128xf32>
    %c9_19 = arith.constant 9 : index
    %45 = memref.load %arg1[%c9_19] : memref<10xf32, #tpu.memory_space<smem>>
    %46 = vector.broadcast %45 : f32 to vector<1x128xf32>
    %47 = arith.mulf %44, %46 : vector<1x128xf32>
    %48 = arith.addf %43, %47 : vector<1x128xf32>
    %cst = arith.constant 3.14159274 : f32
    %49 = vector.broadcast %cst : f32 to vector<1x128xf32>
    %50 = arith.mulf %49, %48 : vector<1x128xf32>
    %51 = math.cos %50 : vector<1x128xf32>
    %cst_20 = arith.constant 1.000000e+00 : f32
    %52 = vector.broadcast %cst_20 : f32 to vector<1x128xf32>
    %53 = arith.subf %52, %51 : vector<1x128xf32>
    %cst_21 = arith.constant 5.000000e-01 : f32
    %54 = vector.broadcast %cst_21 : f32 to vector<1x128xf32>
    %55 = arith.mulf %53, %54 : vector<1x128xf32>
    %c0_22 = arith.constant 0 : index
    %c0_23 = arith.constant 0 : index
    %56 = vector.load %arg3[%c0_22, %c0_23] : memref<1x128xf32, #tpu.memory_space<vmem>>, vector<1x128xf32>
    tpu.vector_store %arg3[%c0_22, %c0_23], %55 {strides = array<i32>} : memref<1x128xf32, #tpu.memory_space<vmem>>, vector<1x128xf32>,
    return
  }
  func.func @transform_0(%arg0: i32) -> i32 {
    %c0_i32 = arith.constant 0 : i32
    %c0_i32_0 = arith.constant 0 : i32
    return %c0_i32 : i32
  }
  func.func @transform_1(%arg0: i32) -> (i32, i32) {
    %c0_i32 = arith.constant 0 : i32
    %c0_i32_0 = arith.constant 0 : i32
    return %c0_i32, %arg0 : i32, i32
  }
  func.func @transform_2(%arg0: i32) -> (i32, i32) {
    %c0_i32 = arith.constant 0 : i32
    %c0_i32_0 = arith.constant 0 : i32
    return %c0_i32, %arg0 : i32, i32
  }
}

</mosaic_0001>

<bundles_post_ra>
// kernel: tpu_custom_call.1
= control target key start
LH: loop header
LB: loop body
LE: loop exit
PB: predicated region body
PF: predicated region fallthrough
CT: control target
= control target key end

     0   :  { %7 = vsyncpa [#allocation5], 0  ;;  %s446_s0 = inlined_call_operand.hbm [shape: f32[10], index: 0, kind: input, shape index: {}]   ;;  %s447_s1 = inlined_call_operand.hbm [shape: f32[10,128], index: 1, kind: input, shape index: {}]   ;;  %s448_s2 = inlined_call_operand.hbm [shape: f32[1,128], index: 2, kind: output, shape index: {}]  }
   0x1   :  { %8 = vsyncpa [#allocation3], 0 }
   0x2   :  { %9 = vsyncpa [#allocation4], 0  ;;  %s15_s11 = sshll.u32 %s446_s0, 4  ;;  %s23_s14 = sshll.u32 %s447_s1, 4  ;;  %s16_s11 = int_to_ptr.hbm [resolvable:$true] %s15_s11  ;;  %s24_s14 = int_to_ptr.hbm [resolvable:$true] %s23_s14 }
   0x3   :  { %s356_s15 = smov [#allocation2]   ;;  %s357_s16 = smov [#allocation6]  }
   0x4   :  { %18 = dma.hbm_to_smem %s16_s11, 16, %s356_s15, [#allocation5]  }
   0x5   :  { %s25_s17 = sshll.u32 %s357_s16, 4  ;;  %s358_s18 = smov 128   ;;  %s26_s17 = int_to_ptr.vmem [resolvable:$true] %s25_s17 }
   0x6   :  { %s359_s19 = smov 8  }
   0x7   :  { %31 = dma.hbm_to_vmem [thread:$0]  %s24_s14, 256, %s26_s17, [#allocation3], %s358_s18, %s358_s18, %s359_s19  }
   0x8   :  { %350 = dma.done.wait [#allocation5], 16  }
   0x9   :  { %351 = vsyncadd [#allocation5], 4294967280 }
   0xa   :  { %352 = dma.done.wait [#allocation3], 256  }
   0xb   :  { %353 = vsyncadd [#allocation3], 4294967040 }
   0xc   :  { %40 = sfence }
   0xd   :  { %s42_s0 = sld [smem:[#allocation2]]  ;;  %v41_v0 = vld [vmem:[#allocation6] sm:$0x1]  ;;  %v45_v1 = vld [vmem:[#allocation6 + $0x1] sm:$0x1]  ;;  %s367_s28 = smov [#allocation7]  }
   0xe   :  { %s266_s20 = sld [smem:[#allocation2 + $0x1]]  ;;  %v50_v3 = vld [vmem:[#allocation6 + $0x2] sm:$0x1]  ;;  %v55_v6 = vld [vmem:[#allocation6 + $0x3] sm:$0x1]  ;;  %s253_s29 = sshll.u32 %s367_s28, 4  ;;  %s254_s29 = int_to_ptr.vmem [resolvable:$true] %s253_s29 }
   0xf   :  { %s267_s21 = sld [smem:[#allocation2 + $0x2]]  ;;  %v60_v11 = vld [vmem:[#allocation6 + $0x4] sm:$0x1]  ;;  %v65_v15 = vld [vmem:[#allocation6 + $0x5] sm:$0x1]  ;;  %s255_s4 = sshll.u32 %s448_s2, 4  ;;  %s256_s4 = int_to_ptr.hbm [resolvable:$true] %s255_s4 }
  0x10   :  { %s268_s22 = sld [smem:[#allocation2 + $0x3]]  ;;  %v70_v19 = vld [vmem:[#allocation6 + $0x6] sm:$0x1]  ;;  %v75_v23 = vld [vmem:[#allocation6 + $0x7] sm:$0x1] }
  0x11   :  { %s269_s1 = sld [smem:[#allocation2 + $0x4]]  ;;  %v80_v27 = vld [vmem:[#allocation6 + $0x8] sm:$0x1]  ;;  %v85_v31 = vld [vmem:[#allocation6 + $0x9] sm:$0x1] }
  0x12   :  { %s270_s23 = sld [smem:[#allocation2 + $0x5]]  ;;  %v360_v51 = vmov 683565275   ;;  %v361_v53 = vmov 2475754826  }
  0x13   :  { %v43_v2 = vstv %s42_s0  ;;  %s271_s24 = sld [smem:[#allocation2 + $0x6]]  ;;  %v362_v55 = vmov 2131351028   ;;  %v363_v57 = vmov 2102212464  }
  0x14   :  { %v44_v4 = vmul.f32 %v43_v2, %v41_v0  ;;  %v47_v5 = vstv %s266_s20  ;;  %s272_s25 = sld [smem:[#allocation2 + $0x7]]  ;;  %v364_v59 = vmov 920167782  }
  0x15   :  { %v48_v7 = vmul.f32 %v47_v5, %v45_v1  ;;  %v52_v8 = vstv %s267_s21  ;;  %s273_s26 = sld [smem:[#allocation2 + $0x8]]  ;;  %v365_v1 = vmov 1326507024  }
  0x16   :  { %v53_v9 = vmul.f32 %v52_v8, %v50_v3  ;;  %v57_v10 = vstv %s268_s22  ;;  %s274_s27 = sld [smem:[#allocation2 + $0x9]] }
  0x17   :  { %v49_v12 = vadd.f32 %v48_v7, %v44_v4  ;;  %v58_v13 = vmul.f32 %v57_v10, %v55_v6  ;;  %v62_v14 = vstv %s269_s1 }
  0x18   :  { %v67_v16 = vstv %s270_s23  ;;  %v63_v18 = vmul.f32 %v62_v14, %v60_v11 }
  0x19   :  { %v54_v17 = vadd.f32 %v53_v9, %v49_v12  ;;  %v72_v20 = vstv %s271_s24  ;;  %v68_v22 = vmul.f32 %v67_v16, %v65_v15 }
  0x1a   :  { %v77_v24 = vstv %s272_s25  ;;  %v73_v26 = vmul.f32 %v72_v20, %v70_v19 }
  0x1b   :  { %v59_v21 = vadd.f32 %v58_v13, %v54_v17  ;;  %v82_v28 = vstv %s273_s26  ;;  %v78_v30 = vmul.f32 %v77_v24, %v75_v23 }
  0x1c   :  { %v87_v32 = vstv %s274_s27  ;;  %v83_v34 = vmul.f32 %v82_v28, %v80_v27 }
  0x1d   :  { %v64_v25 = vadd.f32 %v63_v18, %v59_v21  ;;  %v88_v36 = vmul.f32 %v87_v32, %v85_v31 }
  0x1f   :  { %v69_v29 = vadd.f32 %v68_v22, %v64_v25 }
  0x21   :  { %v74_v33 = vadd.f32 %v73_v26, %v69_v29 }
  0x23   :  { %v79_v35 = vadd.f32 %v78_v30, %v74_v33 }
  0x25   :  { %v84_v37 = vadd.f32 %v83_v34, %v79_v35 }
  0x27   :  { %v89_v38 = vadd.f32 %v88_v36, %v84_v37 }
  0x29   :  { %v389_v39 = vmul.f32 3.1415927, %v89_v38 }
  0x2b   :  { %v94_v40 = vand.u32 2139095040, %v389_v39  ;;  %v91_v42 = vand.u32 2147483647, %v389_v39  ;;  %vm93_vm12 = vcmp.lt.s32.totalorder %v389_v39, 0 }
  0x2d   :  { %v95_v41 = vshrl.u32 %v94_v40, 23  ;;  %v98_v45 = vand.u32 8388607, %v91_v42  ;;  %v366_v40 = vmov 0   ;;  %vm433_vm13 = vcmp.le.f32.partialorder %v91_v42, 0.7853982 }
  0x2f   :  { %v275_v43 = vadd.s32 4294967169, %v95_v41  ;;  %v99_v48 = vor.u32 8388608, %v98_v45 }
  0x31   :  { %v101_v44 = vadd.s32 1, %v275_v43  ;;  %v398_v3 = vshll.u32 %v99_v48, 8 }
  0x33   :  { %vm102_vm0 = vcmp.gt.s32.totalorder %v101_v44, 0  ;;  %v140_v15 = vand.u32 65535, %v398_v3  ;;  %v141_v16 = vshrl.u32 %v398_v3, 16 }
  0x34   :  { %v103_v46 = vsel %vm102_vm0, %v101_v44, 0 }
  0x35   :  { %v105_v47 = vand.u32 31, %v103_v46  ;;  %v395_v49 = vshrl.u32 %v103_v46, 5 }
  0x37   :  { %v106_v50 = vsub.s32 32, %v105_v47  ;;  %v108_v52 = vshll.u32 %v360_v51, %v105_v47  ;;  %v111_v54 = vshll.u32 %v361_v53, %v105_v47  ;;  %v114_v56 = vshll.u32 %v362_v55, %v105_v47 }
  0x38   :  { %v117_v58 = vshll.u32 %v363_v57, %v105_v47  ;;  %v120_v60 = vshll.u32 %v364_v59, %v105_v47  ;;  %vm123_vm1 = vcmp.lt.s32.totalorder %v395_v49, 1  ;;  %vm126_vm2 = vcmp.lt.s32.totalorder %v395_v49, 4 }
  0x39   :  { %v109_v61 = vshrl.u32 %v361_v53, %v106_v50  ;;  %v112_v62 = vshrl.u32 %v362_v55, %v106_v50  ;;  %v115_v63 = vshrl.u32 %v363_v57, %v106_v50  ;;  %v118_v0 = vshrl.u32 %v364_v59, %v106_v50 }
  0x3a   :  { %v121_v2 = vshrl.u32 %v365_v1, %v106_v50  ;;  %vm125_vm3 = vcmp.lt.s32.totalorder %v395_v49, 3  ;;  %vm124_vm4 = vcmp.lt.s32.totalorder %v395_v49, 2  ;;  %v107_v23 = vshrl.u32 %v360_v51, %v106_v50 }
  0x3b   :  { %v110_v4 = vor.u32 %v109_v61, %v108_v52  ;;  %v113_v5 = vor.u32 %v112_v62, %v111_v54  ;;  %v116_v6 = vor.u32 %v115_v63, %v114_v56  ;;  %v119_v7 = vor.u32 %v118_v0, %v117_v58 }
  0x3c   :  { %v122_v8 = vor.u32 %v121_v2, %v120_v60 }
  0x3d   :  { %v131_v9 = vsel %vm123_vm1, %v110_v4, %v113_v5  ;;  %v135_v10 = vsel %vm123_vm1, %v113_v5, %v116_v6  ;;  %v132_v11 = vsel %vm126_vm2, %v119_v7, 920167782  ;;  %v127_v36 = vsel %vm123_vm1, %v107_v23, %v110_v4 }
  0x3e   :  { %v136_v12 = vsel %vm126_vm2, %v122_v8, 1326507024  ;;  %v133_v13 = vsel %vm125_vm3, %v116_v6, %v132_v11  ;;  %v128_v38 = vsel %vm126_vm2, %v116_v6, 2102212464  ;;  %vm234_vm1 = vweird.f32 %v389_v39 }
  0x3f   :  { %v137_v14 = vsel %vm125_vm3, %v119_v7, %v136_v12  ;;  %v134_v17 = vsel %vm124_vm4, %v131_v9, %v133_v13  ;;  %v129_v51 = vsel %vm125_vm3, %v113_v5, %v128_v38 }
  0x40   :  { %v138_v18 = vsel %vm124_vm4, %v135_v10, %v137_v14  ;;  %v164_v21 = vand.u32 65535, %v134_v17  ;;  %v165_v22 = vshrl.u32 %v134_v17, 16  ;;  %v130_v59 = vsel %vm124_vm4, %v127_v36, %v129_v51 }
  0x41   :  { %v142_v19 = vand.u32 65535, %v138_v18  ;;  %v143_v20 = vshrl.u32 %v138_v18, 16  ;;  %v184_v63 = vmul.u32 %v398_v3, %v130_v59 }
  0x42   :  { %v166_v27 = vmul.u32 %v164_v21, %v140_v15  ;;  %v167_v28 = vmul.u32 %v165_v22, %v140_v15  ;;  %v168_v29 = vmul.u32 %v164_v21, %v141_v16  ;;  %v169_v33 = vmul.u32 %v165_v22, %v141_v16 }
  0x43   :  { %v144_v24 = vmul.u32 %v142_v19, %v140_v15  ;;  %v145_v25 = vmul.u32 %v143_v20, %v140_v15  ;;  %v146_v26 = vmul.u32 %v142_v19, %v141_v16  ;;  %v147_v30 = vmul.u32 %v143_v20, %v141_v16 }
  0x44   :  { %v170_v34 = vshll.u32 %v167_v28, 16  ;;  %v172_v35 = vshll.u32 %v168_v29, 16  ;;  %v171_v48 = vshrl.u32 %v167_v28, 16  ;;  %v173_v55 = vshrl.u32 %v168_v29, 16 }
  0x45   :  { %v148_v31 = vshll.u32 %v145_v25, 16  ;;  %v150_v32 = vshll.u32 %v146_v26, 16  ;;  %v149_v44 = vshrl.u32 %v145_v25, 16  ;;  %v151_v52 = vshrl.u32 %v146_v26, 16 }
  0x46   :  { %vm174_vm6 = vc.u32 %v166_v27, %v170_v34  ;;  %v176_v43 = vadd.s32 %v170_v34, %v166_v27 }
  0x47   :  { %vm152_vm5 = vc.u32 %v144_v24, %v148_v31  ;;  %v154_v37 = vadd.s32 %v148_v31, %v144_v24  ;;  %v175_v46 = vsel %vm174_vm6, 1, %v366_v40 }
  0x48   :  { %v153_v41 = vsel %vm152_vm5, 1, %v366_v40  ;;  %v177_v50 = vadd.s32 %v175_v46, %v169_v33  ;;  %vm178_vm8 = vc.u32 %v176_v43, %v172_v35  ;;  %v180_v58 = vadd.s32 %v176_v43, %v172_v35 }
  0x49   :  { %v155_v45 = vadd.s32 %v153_v41, %v147_v30  ;;  %vm156_vm7 = vc.u32 %v154_v37, %v150_v32  ;;  %v179_v54 = vsel %vm178_vm8, 1, %v366_v40 }
  0x4a   :  { %v157_v47 = vsel %vm156_vm7, 1, %v366_v40  ;;  %v181_v56 = vadd.s32 %v179_v54, %v177_v50 }
  0x4b   :  { %v159_v53 = vadd.s32 %v157_v47, %v155_v45 }
  0x4c   :  { %v182_v60 = vadd.s32 %v181_v56, %v171_v48 }
  0x4d   :  { %v160_v57 = vadd.s32 %v159_v53, %v149_v44 }
  0x4e   :  { %v183_v62 = vadd.s32 %v182_v60, %v173_v55 }
  0x4f   :  { %v161_v61 = vadd.s32 %v160_v57, %v151_v52 }
  0x50   :  { %v187_v0 = vadd.s32 1, %v183_v62 }
  0x51   :  { %vm186_vm9 = vc.u32 %v161_v61, %v180_v58  ;;  %v185_v49 = vadd.s32 %v180_v58, %v161_v61 }
  0x52   :  { %v188_v1 = vsel %vm186_vm9, %v187_v0, %v183_v62 }
  0x53   :  { %v189_v2 = vadd.s32 %v188_v1, %v184_v63 }
  0x55   :  { %v190_v4 = vadd.s32 536870912, %v189_v2 }
  0x57   :  { %v191_v5 = vshrl.u32 %v190_v4, 30 }
  0x59   :  { %v192_v6 = vshll.u32 %v191_v5, 30  ;;  %v215_v26 = vsub.s32 4, %v191_v5 }
  0x5b   :  { %v193_v7 = vsub.s32 %v189_v2, %v192_v6  ;;  %v216_v31 = vsel %vm93_vm12, %v215_v26, %v191_v5 }
  0x5c   :  { %v218_v34 = vsel %vm433_vm13, 0, %v216_v31 }
  0x5d   :  { %vm194_vm10 = vcmp.lt.s32.totalorder %v193_v7, 0  ;;  %v195_v8 = vsub.s32 0, %v193_v7  ;;  %v235_v38 = vand.u32 3, %v218_v34 }
  0x5f   :  { %v196_v9 = vsel %vm194_vm10, %v195_v8, %v193_v7  ;;  %vm240_vm14 = vcmp.eq.s32.totalorder %v235_v38, 2  ;;  %vm237_vm15 = vcmp.eq.s32.totalorder %v235_v38, 0  ;;  %vm236_vm0 = vcmp.lt.s32.totalorder %v235_v38, 2 }
  0x60   :  { %v197_v10 = vclz %v196_v9 }
  0x62   :  { %v276_v11 = vadd.s32 4294967294, %v197_v10 }
  0x64   :  { %vm277_vm11 = vcmp.lt.s32.totalorder %v276_v11, 0 }
  0x65   :  { %v200_v12 = vsel %vm277_vm11, 0, %v276_v11 }
  0x66   :  { %v201_v13 = vsub.s32 32, %v200_v12  ;;  %v202_v14 = vshll.u32 %v193_v7, %v200_v12  ;;  %v205_v15 = vsub.s32 4294967266, %v200_v12 }
  0x68   :  { %v203_v3 = vshrl.u32 %v185_v49, %v201_v13  ;;  %v206_v16 = vadd.s32 127, %v205_v15 }
  0x6a   :  { %v204_v17 = vor.u32 %v203_v3, %v202_v14  ;;  %v207_v18 = vshll.u32 %v206_v16, 23 }
  0x6c   :  { %v208_v19 = vor.u32 4788187, %v207_v18  ;;  %v211_v20 = vcvt.s32.f32 %v204_v17 }
  0x6e   :  { %v209_v21 = vand.u32 2147483647, %v208_v19 }
  0x70   :  { %v212_v22 = vmul.f32 %v211_v20, %v209_v21 }
  0x72   :  { %v213_v24 = vxor.u32 2147483648, %v212_v22 }
  0x74   :  { %v214_v25 = vsel %vm93_vm12, %v213_v24, %v212_v22 }
  0x75   :  { %v217_v27 = vsel %vm433_vm13, %v389_v39, %v214_v25 }
  0x76   :  { %v219_v28 = vmul.f32 %v217_v27, %v217_v27 }
  0x78   :  { %v220_v29 = vmul.f32 -0.001358992, %v219_v28  ;;  %v227_v30 = vmul.f32 -0.00019511016, %v219_v28 }
  0x7a   :  { %v221_v32 = vadd.f32 0.041655596, %v220_v29  ;;  %v228_v33 = vadd.f32 0.008332121, %v227_v30 }
  0x7c   :  { %v222_v42 = vmul.f32 %v221_v32, %v219_v28  ;;  %v229_v35 = vmul.f32 %v228_v33, %v219_v28 }
  0x7e   :  { %v223_v36 = vadd.f32 -0.4999988, %v222_v42  ;;  %v230_v37 = vadd.f32 -0.16666654, %v229_v35 }
  0x80   :  { %v224_v40 = vmul.f32 %v223_v36, %v219_v28  ;;  %v231_v41 = vmul.f32 %v230_v37, %v219_v28 }
  0x82   :  { %v225_v43 = vadd.f32 1.0, %v224_v40  ;;  %v232_v44 = vadd.f32 1.0, %v231_v41 }
  0x84   :  { %v233_v45 = vmul.f32 %v232_v44, %v217_v27  ;;  %v241_v46 = vxor.u32 2147483648, %v225_v43 }
  0x86   :  { %v238_v47 = vxor.u32 2147483648, %v233_v45  ;;  %v242_v48 = vsel %vm240_vm14, %v241_v46, %v233_v45 }
  0x88   :  { %v239_v50 = vsel %vm237_vm15, %v225_v43, %v238_v47 }
  0x89   :  { %v243_v51 = vsel %vm236_vm0, %v239_v50, %v242_v48 }
  0x8a   :  { %v244_v52 = vsel %vm234_vm1, nan, %v243_v51 }
  0x8b   :  { %v245_v53 = vsub.f32 1.0, %v244_v52 }
  0x8d   :  { %v246_v54 = vmul.f32 0.5, %v245_v53 }
  0x8f   :  { %247 = vst [vmem:[#allocation7] sm:$0x1] %v246_v54 }
  0x90   :  { %258 = dma.vmem_to_hbm [thread:$0]  %s254_s29, 16, %s256_s4, [#allocation4]  }
  0x91   :  { %354 = dma.done.wait [#allocation4], 16  }
  0x92   :  { %355 = vsyncadd [#allocation4], 4294967280 }
  0x93   :  { %263 = vsyncpa [#allocation3], 1 }
  0x94   :  { %264 = vsyncpa [#allocation4], 1 }
  0x95   :  { %265 = vsyncpa [#allocation5], 1 }

</bundles_post_ra>
